<compile_context>
chip_gen: v5e
topology: v5e:2x2
jax: 0.10.0
libtpu: 0.0.40
codegen_flags: <defaults>
</compile_context>

<pallas_src>
import jax
import jax.numpy as jnp
from jax.experimental import pallas as pl
from jax.experimental.pallas import tpu as pltpu

D_IN, D_H1, D_H2, D_OUT = 42, 128, 64, 3


def mlp_kernel(x_ref, w1_ref, b1_ref, w2_ref, b2_ref, w3_ref, b3_ref, o_ref):
    # Cast the streamed f32 x tile to bf16 in-kernel (VPU cast, nearly free).
    x = x_ref[...].astype(jnp.bfloat16)
    # fc1 + relu  (bf16 operands, f32 accumulate / elementwise)
    h1 = jnp.dot(x, w1_ref[...], preferred_element_type=jnp.float32)
    h1 = jnp.maximum(h1 + b1_ref[...], 0.0)
    # fc2 + relu
    h2 = jnp.dot(h1.astype(jnp.bfloat16), w2_ref[...],
                 preferred_element_type=jnp.float32)
    h2 = jnp.maximum(h2 + b2_ref[...], 0.0)
    # fc3 (no activation); narrow (TB, 3) output is written as-is (no lane padding).
    h3 = jnp.dot(h2.astype(jnp.bfloat16), w3_ref[...],
                 preferred_element_type=jnp.float32)
    o_ref[...] = (h3 + b3_ref[...]).astype(o_ref.dtype)


def _round_up(n, m):
    return ((n + m - 1) // m) * m


def _choose_tile(B, tb_max):
    """Pick a batch tile that keeps tail-padding waste small.

    Small B: one tile (rounded to the f32 sublane multiple of 8).
    Large B: split into ceil(B / tb_max) steps and round the per-step tile up to 16,
    bounding padding waste to ~16 * n_steps rows instead of up to TB-1.
    """
    if B <= tb_max:
        return max(_round_up(B, 8), 8)
    n_steps = (B + tb_max - 1) // tb_max
    return _round_up((B + n_steps - 1) // n_steps, 16)


def connect4_forward(x, params, *, tb=2048):
    """x: [B, 42] float32. params: dict of w1,b1,w2,b2,w3,b3 (weights as [in, out]).

    Returns [B, 3] float32 logits matching the PyTorch Connect4Model forward.
    """
    B = x.shape[0]
    TB = _choose_tile(B, tb)
    B_pad = _round_up(B, TB)
    grid = (B_pad // TB,)

    # x stays f32 (cast to bf16 inside the kernel); only pad the (small) batch tail.
    x_p = x if B_pad == B else jnp.pad(x, ((0, B_pad - B), (0, 0)))

    # Weights are tiny & VMEM-resident: cast once to bf16; biases stay f32.
    w1 = params["w1"].astype(jnp.bfloat16)
    w2 = params["w2"].astype(jnp.bfloat16)
    w3 = params["w3"].astype(jnp.bfloat16)
    b1 = params["b1"].astype(jnp.float32)
    b2 = params["b2"].astype(jnp.float32)
    b3 = params["b3"].astype(jnp.float32)

    const = lambda i: (0, 0)  # weights/biases stay resident (never re-DMA'd)

    flops = 2 * B_pad * (D_IN * D_H1 + D_H1 * D_H2 + D_H2 * D_OUT)
    bytes_accessed = (
        B_pad * D_IN * 4                                   # x (f32 read)
        + B_pad * D_OUT * 4                                # out (f32 write)
        + (D_IN * D_H1 + D_H1 * D_H2 + D_H2 * D_OUT) * 2   # bf16 weights
        + (D_H1 + D_H2 + D_OUT) * 4                        # f32 biases
    )

    out = pl.pallas_call(
        mlp_kernel,
        out_shape=jax.ShapeDtypeStruct((B_pad, D_OUT), jnp.float32),
        grid=grid,
        in_specs=[
            pl.BlockSpec((TB, D_IN), lambda i: (i, 0)),    # x tile (streamed, f32)
            pl.BlockSpec((D_IN, D_H1), const),             # w1
            pl.BlockSpec((1, D_H1), const),                # b1
            pl.BlockSpec((D_H1, D_H2), const),             # w2
            pl.BlockSpec((1, D_H2), const),                # b2
            pl.BlockSpec((D_H2, D_OUT), const),            # w3
            pl.BlockSpec((1, D_OUT), const),               # b3
        ],
        out_specs=pl.BlockSpec((TB, D_OUT), lambda i: (i, 0)),
        compiler_params=pltpu.CompilerParams(
            # Batch axis independent across grid steps -> shardable over v7x's 2 TCs.
            # TODO(synk): if xprof shows one v7x TC idle, switch to pltpu.CORE_PARALLEL.
            dimension_semantics=("parallel",)),
        cost_estimate=pl.CostEstimate(flops=flops, transcendentals=0,
                                      bytes_accessed=bytes_accessed),
    )(x_p, w1, b1, w2, b2, w3, b3)

    return out if B_pad == B else out[:B]


def init_params(key):
    """Deterministic init matching the PyTorch module's shapes.
    fc1: Linear(42, 128), fc2: Linear(128, 64), fc3: Linear(64, 3).
    Stored transposed ([in, out]) for the x @ W convention used in-kernel.
    Biases stored as [1, out] for clean 2D broadcasting on TPU."""
    ks = jax.random.split(key, 6)

    def uniform_like_torch(k, shape, fan_in):
        bound = 1.0 / jnp.sqrt(fan_in)
        return jax.random.uniform(k, shape, jnp.float32, -bound, bound)

    return {
        "w1": uniform_like_torch(ks[0], (D_IN, D_H1), float(D_IN)),
        "b1": uniform_like_torch(ks[1], (1, D_H1), float(D_IN)),
        "w2": uniform_like_torch(ks[2], (D_H1, D_H2), float(D_H1)),
        "b2": uniform_like_torch(ks[3], (1, D_H2), float(D_H1)),
        "w3": uniform_like_torch(ks[4], (D_H2, D_OUT), float(D_H2)),
        "b3": uniform_like_torch(ks[5], (1, D_OUT), float(D_H2)),
    }


def reference_forward(x, p):
    h1 = jnp.maximum(x @ p["w1"] + p["b1"], 0.0)
    h2 = jnp.maximum(h1 @ p["w2"] + p["b2"], 0.0)
    return h2 @ p["w3"] + p["b3"]


if __name__ == "__main__":
    key = jax.random.PRNGKey(0)
    pkey, xkey = jax.random.split(key)
    params = init_params(pkey)

    B = 8  # small batch; Connect-4 board flattened to 42 features
    x = jax.random.uniform(xkey, (B, 42), jnp.float32, -1.0, 1.0)

    out = connect4_forward(x, params)
    out = jax.block_until_ready(out)

    ref = reference_forward(x, params)
    assert out.shape == (B, 3), out.shape
    # bf16 matmul operands with f32 accumulation -> slightly looser tolerance vs f32 ref.
    assert jnp.allclose(out, ref, atol=2e-2, rtol=2e-2), "mismatch vs reference"

    print("KERNEL_OK")
</pallas_src>

<mosaic_0001>
module attributes {stable_mosaic.version = 11 : i64} {
  func.func @mlp_kernel(%arg0: i32, %arg1: memref<8x42xf32, #tpu.memory_space<vmem>>, %arg2: memref<42x128xbf16, #tpu.memory_space<vmem>>, %arg3: memref<1x128xf32, #tpu.memory_space<vmem>>, %arg4: memref<128x64xbf16, #tpu.memory_space<vmem>>, %arg5: memref<1x64xf32, #tpu.memory_space<vmem>>, %arg6: memref<64x3xbf16, #tpu.memory_space<vmem>>, %arg7: memref<1x3xf32, #tpu.memory_space<vmem>>, %arg8: memref<8x3xf32, #tpu.memory_space<vmem>>) attributes {dimension_semantics = [#tpu.dimension_semantics<parallel>], iteration_bounds = array<i64: 1>, scalar_prefetch = 0 : i64, scratch_operands = 0 : i64, tpu.core_type = #tpu.core_type<tc>, window_params = [{transform_indices = @transform_0, window_bounds = array<i64: 8, 42>}, {pipeline_mode = #tpu.pipeline_mode<synchronous>, transform_indices = @transform_1, window_bounds = array<i64: 42, 128>}, {pipeline_mode = #tpu.pipeline_mode<synchronous>, transform_indices = @transform_2, window_bounds = array<i64: 1, 128>}, {pipeline_mode = #tpu.pipeline_mode<synchronous>, transform_indices = @transform_3, window_bounds = array<i64: 128, 64>}, {pipeline_mode = #tpu.pipeline_mode<synchronous>, transform_indices = @transform_4, window_bounds = array<i64: 1, 64>}, {pipeline_mode = #tpu.pipeline_mode<synchronous>, transform_indices = @transform_5, window_bounds = array<i64: 64, 3>}, {pipeline_mode = #tpu.pipeline_mode<synchronous>, transform_indices = @transform_6, window_bounds = array<i64: 1, 3>}, {transform_indices = @transform_7, window_bounds = array<i64: 8, 3>}]} {
    %c0 = arith.constant 0 : index
    %c0_0 = arith.constant 0 : index
    %0 = vector.load %arg1[%c0, %c0_0] : memref<8x42xf32, #tpu.memory_space<vmem>>, vector<8x42xf32>
    %1 = arith.truncf %0 : vector<8x42xf32> to vector<8x42xbf16>
    %c0_1 = arith.constant 0 : index
    %c0_2 = arith.constant 0 : index
    %2 = vector.load %arg2[%c0_1, %c0_2] : memref<42x128xbf16, #tpu.memory_space<vmem>>, vector<42x128xbf16>
    %cst = arith.constant dense<0.000000e+00> : vector<8x128xf32>
    %3 = tpu.matmul %1, %2, %cst {dimension_numbers = #tpu.dot_dimension_numbers<[1], [0], [0], [1], [0, 0, 1, 1], [], []>} : vector<8x42xbf16>, vector<42x128xbf16>, vector<8x128xf32> -> vector<8x128xf32>
    %c0_3 = arith.constant 0 : index
    %c0_4 = arith.constant 0 : index
    %4 = vector.load %arg3[%c0_3, %c0_4] : memref<1x128xf32, #tpu.memory_space<vmem>>, vector<1x128xf32>
    %5 = vector.broadcast %4 : vector<1x128xf32> to vector<8x128xf32>
    %6 = arith.addf %3, %5 : vector<8x128xf32>
    %cst_5 = arith.constant 0.000000e+00 : f32
    %7 = vector.broadcast %cst_5 : f32 to vector<8x128xf32>
    %8 = arith.maximumf %6, %7 : vector<8x128xf32>
    %9 = arith.truncf %8 : vector<8x128xf32> to vector<8x128xbf16>
    %c0_6 = arith.constant 0 : index
    %c0_7 = arith.constant 0 : index
    %10 = vector.load %arg4[%c0_6, %c0_7] : memref<128x64xbf16, #tpu.memory_space<vmem>>, vector<128x64xbf16>
    %cst_8 = arith.constant dense<0.000000e+00> : vector<8x64xf32>
    %11 = tpu.matmul %9, %10, %cst_8 {dimension_numbers = #tpu.dot_dimension_numbers<[1], [0], [0], [1], [0, 0, 1, 1], [], []>} : vector<8x128xbf16>, vector<128x64xbf16>, vector<8x64xf32> -> vector<8x64xf32>
    %c0_9 = arith.constant 0 : index
    %c0_10 = arith.constant 0 : index
    %12 = vector.load %arg5[%c0_9, %c0_10] : memref<1x64xf32, #tpu.memory_space<vmem>>, vector<1x64xf32>
    %13 = vector.broadcast %12 : vector<1x64xf32> to vector<8x64xf32>
    %14 = arith.addf %11, %13 : vector<8x64xf32>
    %cst_11 = arith.constant 0.000000e+00 : f32
    %15 = vector.broadcast %cst_11 : f32 to vector<8x64xf32>
    %16 = arith.maximumf %14, %15 : vector<8x64xf32>
    %17 = arith.truncf %16 : vector<8x64xf32> to vector<8x64xbf16>
    %c0_12 = arith.constant 0 : index
    %c0_13 = arith.constant 0 : index
    %18 = vector.load %arg6[%c0_12, %c0_13] : memref<64x3xbf16, #tpu.memory_space<vmem>>, vector<64x3xbf16>
    %cst_14 = arith.constant dense<0.000000e+00> : vector<8x3xf32>
    %19 = tpu.matmul %17, %18, %cst_14 {dimension_numbers = #tpu.dot_dimension_numbers<[1], [0], [0], [1], [0, 0, 1, 1], [], []>} : vector<8x64xbf16>, vector<64x3xbf16>, vector<8x3xf32> -> vector<8x3xf32>
    %c0_15 = arith.constant 0 : index
    %c0_16 = arith.constant 0 : index
    %20 = vector.load %arg7[%c0_15, %c0_16] : memref<1x3xf32, #tpu.memory_space<vmem>>, vector<1x3xf32>
    %21 = vector.broadcast %20 : vector<1x3xf32> to vector<8x3xf32>
    %22 = arith.addf %19, %21 : vector<8x3xf32>
    %c0_17 = arith.constant 0 : index
    %c0_18 = arith.constant 0 : index
    %23 = vector.load %arg8[%c0_17, %c0_18] : memref<8x3xf32, #tpu.memory_space<vmem>>, vector<8x3xf32>
    tpu.vector_store %arg8[%c0_17, %c0_18], %22 {strides = array<i32>} : memref<8x3xf32, #tpu.memory_space<vmem>>, vector<8x3xf32>,
    return
  }
  func.func @transform_0(%arg0: i32) -> (i32, i32) {
    %c0_i32 = arith.constant 0 : i32
    %c0_i32_0 = arith.constant 0 : i32
    return %arg0, %c0_i32 : i32, i32
  }
  func.func @transform_1(%arg0: i32) -> (i32, i32) {
    %c0_i32 = arith.constant 0 : i32
    %c0_i32_0 = arith.constant 0 : i32
    %c0_i32_1 = arith.constant 0 : i32
    return %c0_i32, %c0_i32_0 : i32, i32
  }
  func.func @transform_2(%arg0: i32) -> (i32, i32) {
    %c0_i32 = arith.constant 0 : i32
    %c0_i32_0 = arith.constant 0 : i32
    %c0_i32_1 = arith.constant 0 : i32
    return %c0_i32, %c0_i32_0 : i32, i32
  }
  func.func @transform_3(%arg0: i32) -> (i32, i32) {
    %c0_i32 = arith.constant 0 : i32
    %c0_i32_0 = arith.constant 0 : i32
    %c0_i32_1 = arith.constant 0 : i32
    return %c0_i32, %c0_i32_0 : i32, i32
  }
  func.func @transform_4(%arg0: i32) -> (i32, i32) {
    %c0_i32 = arith.constant 0 : i32
    %c0_i32_0 = arith.constant 0 : i32
    %c0_i32_1 = arith.constant 0 : i32
    return %c0_i32, %c0_i32_0 : i32, i32
  }
  func.func @transform_5(%arg0: i32) -> (i32, i32) {
    %c0_i32 = arith.constant 0 : i32
    %c0_i32_0 = arith.constant 0 : i32
    %c0_i32_1 = arith.constant 0 : i32
    return %c0_i32, %c0_i32_0 : i32, i32
  }
  func.func @transform_6(%arg0: i32) -> (i32, i32) {
    %c0_i32 = arith.constant 0 : i32
    %c0_i32_0 = arith.constant 0 : i32
    %c0_i32_1 = arith.constant 0 : i32
    return %c0_i32, %c0_i32_0 : i32, i32
  }
  func.func @transform_7(%arg0: i32) -> (i32, i32) {
    %c0_i32 = arith.constant 0 : i32
    %c0_i32_0 = arith.constant 0 : i32
    return %arg0, %c0_i32 : i32, i32
  }
}

</mosaic_0001>

<bundles_post_ra>
// kernel: tpu_custom_call.1
= control target key start
LH: loop header
LB: loop body
LE: loop exit
PB: predicated region body
PF: predicated region fallthrough
CT: control target
= control target key end

     0   :  { %vm60_vm0 = vcmask 1044480   ;;  %vm56_vm1 = vcmask 343040   ;;  %vm198_vm2 = vcmask 523264   ;;  %vm215_vm3 = vcmask 23552   ;;  %s404_s1 = inlined_call_operand.vmem [shape: bf16[42,128], index: 1, kind: input, shape index: {}]   ;;  %s405_s3 = inlined_call_operand.vmem [shape: bf16[128,64], index: 3, kind: input, shape index: {}]   ;;  %s406_s2 = inlined_call_operand.vmem [shape: f32[1,128], index: 2, kind: input, shape index: {}]   ;;  %s407_s0 = inlined_call_operand.vmem [shape: f32[8,42], index: 0, kind: input, shape index: {}]   ;;  %s408_s4 = inlined_call_operand.vmem [shape: f32[1,64], index: 4, kind: input, shape index: {}]   ;;  %s409_s5 = inlined_call_operand.vmem [shape: bf16[64,3], index: 5, kind: input, shape index: {}]   ;;  %s410_s6 = inlined_call_operand.vmem [shape: f32[1,3], index: 6, kind: input, shape index: {}]   ;;  %s411_s7 = inlined_call_operand.vmem [shape: f32[8,3], index: 7, kind: output, shape index: {}]  }
   0x1   :  { %v231_v0 = vld [vmem:[%s404_s1 + $0x10] sm:$0xf]  ;;  %v285_v1 = vld [vmem:[%s404_s1 + $0x10] sm:$0x10]  ;;  %v293_v3 = vld [vmem:[%s405_s3 + $0x38] sm:$0xff] }
   0x2   :  { %v232_v2 = vor.u32 %v285_v1, %v231_v0  ;;  %147 = vmatpush.bf16.msra.mxu1 %v293_v3  ;;  %v292_v5 = vld [vmem:[%s405_s3 + $0x30] sm:$0xff]  ;;  %v284_v6 = vld [vmem:[%s404_s1 + $0x8] sm:$0xff]  ;;  %v283_v8 = vld [vmem:[%s404_s1] sm:$0xff] }
   0x3   :  { %v291_v7 = vld [vmem:[%s405_s3 + $0x28] sm:$0xff]  ;;  %v27_v9 = vld [vmem:[%s407_s0] sm:$0xff]  ;;  %v289_v12 = vld [vmem:[%s405_s3 + $0x18] sm:$0xff] }
   0x4   :  { %v62_v4 = vsel %vm60_vm0, %v232_v2, 0  ;;  %v28_v10 = vpack.c.bf16 %v27_v9, %v27_v9  ;;  %v290_v11 = vld [vmem:[%s405_s3 + $0x20] sm:$0xff]  ;;  %v288_v13 = vld [vmem:[%s405_s3 + $0x10] sm:$0xff]  ;;  %v287_v14 = vld [vmem:[%s405_s3 + $0x8] sm:$0xff] }
   0x5   :  { %69 = vmatpush.bf16.msra.mxu0 %v62_v4  ;;  %v286_v15 = vld [vmem:[%s405_s3] sm:$0xff]  ;;  %v297_v16 = vld [vmem:[%s409_s5 + $0x18] sm:$0xff]  ;;  %v296_v17 = vld [vmem:[%s409_s5 + $0x10] sm:$0xff] }
   0x6   :  { %148 = vmatpush.bf16.msra.mxu1 %v292_v5  ;;  %206 = vmatpush.bf16.msra.mxu2 %v297_v16  ;;  %v298_v18 = vld [vmem:[%s406_s2] ss:$0 sm:$0xff]  ;;  %v295_v24 = vld [vmem:[%s409_s5 + $0x8] sm:$0xff] }
   0x7   :  { %v294_v25 = vld [vmem:[%s409_s5] sm:$0xff] }
   0x8   :  { %v299_v26 = vld [vmem:[%s408_s4] ss:$0 sm:$0xff] }
   0x9   :  { %70 = vmatpush.bf16.msra.mxu0 %v284_v6  ;;  %v300_v32 = vld [vmem:[%s410_s6] ss:$0 sm:$0xff] }
   0xa   :  { %149 = vmatpush.bf16.msra.mxu1 %v291_v7  ;;  %207 = vmatpush.bf16.msra.mxu2 %v296_v17 }
   0xd   :  { %71 = vmatpush.bf16.msra.mxu0 %v283_v8 }
   0xe   :  { %150 = vmatpush.bf16.msra.mxu1 %v290_v11  ;;  %208 = vmatpush.bf16.msra.mxu2 %v295_v24 }
  0x10   :  { %233 = vmatmul.msk.bf16.vlgmr.msra.gmra.mxu0 %vm56_vm1, %v28_v10 }
  0x12   :  { %151 = vmatpush.bf16.msra.mxu1 %v289_v12  ;;  %209 = vmatpush.bf16.msra.mxu2 %v294_v25 }
  0x16   :  { %152 = vmatpush.bf16.msra.mxu1 %v288_v13 }
  0x1a   :  { %153 = vmatpush.bf16.msra.mxu1 %v287_v14 }
  0x1e   :  { %154 = vmatpush.bf16.msra.mxu1 %v286_v15 }
  0x8d   :  { %v73_v19 = vpop.f32.mrf.mxu0 }
  0x8e   :  { %v74_v20 = vadd.f32 %v298_v18, %v73_v19 }
  0x90   :  { %v77_v21 = vmax.f32 %v74_v20, 0.0 }
  0x92   :  { %v78_v22 = vpack.c.bf16 %v77_v21, %v77_v21 }
  0x94   :  { %155 = vmatmul.bf16.vlgmr.msra.gmra.mxu1 %v78_v22 }
  0x95   :  { %v75_v23 = vpop.f32.mrf.mxu0 }
 0x111   :  { %v156_v27 = vpop.f32.mrf.mxu1 }
 0x112   :  { %v157_v28 = vadd.f32 %v299_v26, %v156_v27 }
 0x114   :  { %v160_v29 = vmax.f32 %v157_v28, 0.0 }
 0x116   :  { %v161_v30 = vpack.c.bf16 %v160_v29, %v160_v29 }
 0x118   :  { %282 = vmatmul.msk.bf16.vlgmr.msra.gmra.mxu2 %vm198_vm2, %v161_v30 }
 0x119   :  { %v158_v31 = vpop.f32.mrf.mxu1 }
 0x19b   :  { %v211_v33 = vpop.f32.mrf.mxu2 }
 0x19c   :  { %v212_v34 = vadd.f32 %v300_v32, %v211_v33 }
 0x19e   :  { %216 = vst.msk [vmem:[%s411_s7] sm:$0xff] %vm215_vm3, %v212_v34 }
 0x1a3   :  { %v213_v35 = vpop.f32.mrf.mxu2 }

</bundles_post_ra>
